<compile_context>
chip_gen: v5e
topology: v5e:2x2
jax: 0.10.0
libtpu: 0.0.40
codegen_flags: <defaults>
</compile_context>

<pallas_src>
import functools

import jax
import jax.numpy as jnp
from jax import lax
from jax.experimental import pallas as pl
from jax.experimental.pallas import tpu as pltpu


def _valuenet_kernel(*refs, n_layers: int, activation: str):
    """refs = (x_ref, w1_ref, b1_ref, ..., wn_ref, bn_ref, out_ref).

    x_ref:   (TM, obs_dim) f32 tile of the batch.
    hidden layer l:  w (in_l, out_l) [f32 or bf16], b (1, out_l) f32.
    last layer:      w (1, h_last)  [f32 or bf16], b (1, 1) f32.
    out_ref: (1, TM) f32 (lane-dense).
    """
    x_ref = refs[0]
    out_ref = refs[-1]
    param_refs = refs[1:-1]

    act = jnp.tanh if activation == "tanh" else (lambda v: jnp.maximum(v, 0.0))

    h = x_ref[...]  # (TM, obs_dim) f32
    for layer in range(n_layers - 1):
        w = param_refs[2 * layer][...]          # (in, out), possibly bf16
        b = param_refs[2 * layer + 1][...]      # (1, out) f32
        # MXU matmul: operands in w.dtype (bf16 fast path), f32 accumulation.
        h = jnp.dot(h.astype(w.dtype), w, preferred_element_type=jnp.float32) + b
        h = act(h)                              # VPU/EUP work in f32

    # Final (hidden -> 1) layer as a lane-dense (1, TM) contraction:
    # (1, h_last) . (TM, h_last)^T  ->  (1, TM)
    w_last = param_refs[2 * (n_layers - 1)][...]      # (1, h_last)
    b_last = param_refs[2 * (n_layers - 1) + 1][...]  # (1, 1) f32
    v = lax.dot_general(
        w_last, h.astype(w_last.dtype),
        dimension_numbers=(((1,), (1,)), ((), ())),
        preferred_element_type=jnp.float32,
    )                                                 # (1, TM) f32
    out_ref[...] = v + b_last


def value_net_forward(x, params, activation="tanh", use_bf16=True, block_m=512):
    """Run the ValueNet forward pass with a single (gridded) Pallas kernel.

    x:      (batch, obs_dim) float32
    params: list of (W, b) with W: (in, out), b: (1, out)  (f32)
    returns: (batch,) float32   (== torch.squeeze(net(x), -1))
    """
    batch, obs_dim = x.shape
    n_layers = len(params)

    # --- batch tiling: TM multiple of 128 (lane-dense output stores) -------
    tm = block_m
    if batch < tm:
        tm = max(128, ((batch + 127) // 128) * 128)
    padded_batch = ((batch + tm - 1) // tm) * tm
    if padded_batch != batch:
        x = jnp.pad(x, ((0, padded_batch - batch), (0, 0)))
    grid = (padded_batch // tm,)

    w_dtype = jnp.bfloat16 if use_bf16 else jnp.float32

    # --- flatten params; weights pre-cast (once, wrapper-side); last layer
    #     weight transposed to (1, h_last) for the lane-dense contraction ----
    flat_params = []
    in_specs = [pl.BlockSpec((tm, obs_dim), lambda i: (i, 0))]
    for li, (w, b) in enumerate(params):
        if li == n_layers - 1:
            w = w.T                  # (h_last, 1) -> (1, h_last)
            b = b.reshape(1, 1)
        w = w.astype(w_dtype)
        b = b.astype(jnp.float32)
        flat_params.append(w)
        flat_params.append(b)
        # Full-array blocks with constant index_map -> DMA'd once, VMEM-resident.
        in_specs.append(pl.BlockSpec(w.shape, lambda i: (0, 0)))
        in_specs.append(pl.BlockSpec(b.shape, lambda i: (0, 0)))

    # --- advisory cost estimate for XLA scheduling --------------------------
    sizes = [obs_dim] + [wb[0].shape[1] for wb in params[:-1]] + [1]
    flops = 2 * batch * sum(sizes[i] * sizes[i + 1] for i in range(len(sizes) - 1))
    transcendentals = batch * sum(sizes[1:-1]) if activation == "tanh" else 0
    bytes_accessed = (
        x.size * x.dtype.itemsize
        + sum(int(p.size) * p.dtype.itemsize for p in flat_params)
        + padded_batch * 4
    )

    kernel = functools.partial(
        _valuenet_kernel, n_layers=n_layers, activation=activation
    )

    out = pl.pallas_call(
        kernel,
        out_shape=jax.ShapeDtypeStruct((1, padded_batch), jnp.float32),
        grid=grid,
        in_specs=in_specs,
        out_specs=pl.BlockSpec((1, tm), lambda i: (0, i)),
        compiler_params=pltpu.CompilerParams(
            dimension_semantics=("parallel",),
            vmem_limit_bytes=32 * 1024 * 1024,
        ),
        cost_estimate=pl.CostEstimate(
            flops=int(flops),
            transcendentals=int(transcendentals),
            bytes_accessed=int(bytes_accessed),
        ),
    )(x, *flat_params)

    return out[0, :batch]


def init_value_net_params(key, obs_dim, hidden_sizes):
    """Deterministic synthetic init (PyTorch-Linear-like uniform fan-in scaling)."""
    sizes = [obs_dim] + list(hidden_sizes) + [1]
    params = []
    for i in range(len(sizes) - 1):
        fan_in, fan_out = sizes[i], sizes[i + 1]
        key, kw, kb = jax.random.split(key, 3)
        bound = 1.0 / float(fan_in) ** 0.5
        w = jax.random.uniform(
            kw, (fan_in, fan_out), jnp.float32, minval=-bound, maxval=bound
        )
        b = jax.random.uniform(
            kb, (1, fan_out), jnp.float32, minval=-bound, maxval=bound
        )
        params.append((w, b))
    return params


def value_net_reference(x, params, activation="tanh"):
    """Pure-JAX (f32) reference for correctness checking."""
    act = jnp.tanh if activation == "tanh" else (lambda v: jnp.maximum(v, 0.0))
    h = x
    for i, (w, b) in enumerate(params):
        h = h @ w + b
        if i < len(params) - 1:
            h = act(h)
    return jnp.squeeze(h, axis=-1)


if __name__ == "__main__":
    key = jax.random.PRNGKey(0)

    batch = 8
    obs_dim = 16
    hidden_sizes = [32, 32]
    activation = "tanh"   # Union[nn.Tanh, nn.ReLU] -> pick Tanh

    key, kx = jax.random.split(key)
    x = jax.random.normal(kx, (batch, obs_dim), dtype=jnp.float32)
    params = init_value_net_params(key, obs_dim, hidden_sizes)

    ref = value_net_reference(x, params, activation)

    # Exact-semantics check: f32 MXU operands must match the f32 reference.
    out_f32 = jax.block_until_ready(
        value_net_forward(x, params, activation, use_bf16=False)
    )
    assert out_f32.shape == (batch,), out_f32.shape
    assert jnp.allclose(out_f32, ref, atol=1e-5, rtol=1e-5), (out_f32, ref)

    # Fast path: bf16 matmul operands, f32 accumulation -> looser tolerance.
    out_bf16 = jax.block_until_ready(
        value_net_forward(x, params, activation, use_bf16=True)
    )
    assert out_bf16.shape == (batch,), out_bf16.shape
    assert jnp.allclose(out_bf16, ref, atol=5e-2, rtol=5e-2), (out_bf16, ref)

    # Also exercise the ReLU activation path once (runs clean, finite output).
    out_relu = jax.block_until_ready(
        value_net_forward(x, params, "relu", use_bf16=False)
    )
    assert out_relu.shape == (batch,), out_relu.shape
    assert jnp.all(jnp.isfinite(out_relu))
    assert jnp.allclose(out_relu, value_net_reference(x, params, "relu"),
                        atol=1e-5, rtol=1e-5)

    print("KERNEL_OK")
</pallas_src>

<mosaic_0001>
module attributes {stable_mosaic.version = 11 : i64} {
  func.func @_valuenet_kernel(%arg0: i32, %arg1: memref<128x16xf32, #tpu.memory_space<vmem>>, %arg2: memref<16x32xf32, #tpu.memory_space<vmem>>, %arg3: memref<1x32xf32, #tpu.memory_space<vmem>>, %arg4: memref<32x32xf32, #tpu.memory_space<vmem>>, %arg5: memref<1x32xf32, #tpu.memory_space<vmem>>, %arg6: memref<1x32xf32, #tpu.memory_space<vmem>>, %arg7: memref<1x1xf32, #tpu.memory_space<vmem>>, %arg8: memref<1x128xf32, #tpu.memory_space<vmem>>) attributes {dimension_semantics = [#tpu.dimension_semantics<parallel>], iteration_bounds = array<i64: 1>, scalar_prefetch = 0 : i64, scratch_operands = 0 : i64, tpu.core_type = #tpu.core_type<tc>, window_params = [{transform_indices = @transform_0, window_bounds = array<i64: 128, 16>}, {pipeline_mode = #tpu.pipeline_mode<synchronous>, transform_indices = @transform_1, window_bounds = array<i64: 16, 32>}, {pipeline_mode = #tpu.pipeline_mode<synchronous>, transform_indices = @transform_2, window_bounds = array<i64: 1, 32>}, {pipeline_mode = #tpu.pipeline_mode<synchronous>, transform_indices = @transform_3, window_bounds = array<i64: 32, 32>}, {pipeline_mode = #tpu.pipeline_mode<synchronous>, transform_indices = @transform_4, window_bounds = array<i64: 1, 32>}, {pipeline_mode = #tpu.pipeline_mode<synchronous>, transform_indices = @transform_5, window_bounds = array<i64: 1, 32>}, {pipeline_mode = #tpu.pipeline_mode<synchronous>, transform_indices = @transform_6, window_bounds = array<i64: 1, 1>}, {transform_indices = @transform_7, window_bounds = array<i64: 1, 128>}]} {
    %c0 = arith.constant 0 : index
    %c0_0 = arith.constant 0 : index
    %0 = vector.load %arg1[%c0, %c0_0] : memref<128x16xf32, #tpu.memory_space<vmem>>, vector<128x16xf32>
    %c0_1 = arith.constant 0 : index
    %c0_2 = arith.constant 0 : index
    %1 = vector.load %arg2[%c0_1, %c0_2] : memref<16x32xf32, #tpu.memory_space<vmem>>, vector<16x32xf32>
    %c0_3 = arith.constant 0 : index
    %c0_4 = arith.constant 0 : index
    %2 = vector.load %arg3[%c0_3, %c0_4] : memref<1x32xf32, #tpu.memory_space<vmem>>, vector<1x32xf32>
    %cst = arith.constant dense<0.000000e+00> : vector<128x32xf32>
    %3 = tpu.matmul %0, %1, %cst {dimension_numbers = #tpu.dot_dimension_numbers<[1], [0], [0], [1], [0, 0, 1, 1], [], []>} : vector<128x16xf32>, vector<16x32xf32>, vector<128x32xf32> -> vector<128x32xf32>
    %4 = vector.broadcast %2 : vector<1x32xf32> to vector<128x32xf32>
    %5 = arith.addf %3, %4 : vector<128x32xf32>
    %6 = math.tanh %5 : vector<128x32xf32>
    %c0_5 = arith.constant 0 : index
    %c0_6 = arith.constant 0 : index
    %7 = vector.load %arg4[%c0_5, %c0_6] : memref<32x32xf32, #tpu.memory_space<vmem>>, vector<32x32xf32>
    %c0_7 = arith.constant 0 : index
    %c0_8 = arith.constant 0 : index
    %8 = vector.load %arg5[%c0_7, %c0_8] : memref<1x32xf32, #tpu.memory_space<vmem>>, vector<1x32xf32>
    %cst_9 = arith.constant dense<0.000000e+00> : vector<128x32xf32>
    %9 = tpu.matmul %6, %7, %cst_9 {dimension_numbers = #tpu.dot_dimension_numbers<[1], [0], [0], [1], [0, 0, 1, 1], [], []>} : vector<128x32xf32>, vector<32x32xf32>, vector<128x32xf32> -> vector<128x32xf32>
    %10 = vector.broadcast %8 : vector<1x32xf32> to vector<128x32xf32>
    %11 = arith.addf %9, %10 : vector<128x32xf32>
    %12 = math.tanh %11 : vector<128x32xf32>
    %c0_10 = arith.constant 0 : index
    %c0_11 = arith.constant 0 : index
    %13 = vector.load %arg6[%c0_10, %c0_11] : memref<1x32xf32, #tpu.memory_space<vmem>>, vector<1x32xf32>
    %c0_12 = arith.constant 0 : index
    %c0_13 = arith.constant 0 : index
    %14 = vector.load %arg7[%c0_12, %c0_13] : memref<1x1xf32, #tpu.memory_space<vmem>>, vector<1x1xf32>
    %cst_14 = arith.constant dense<0.000000e+00> : vector<1x128xf32>
    %15 = tpu.matmul %13, %12, %cst_14 {dimension_numbers = #tpu.dot_dimension_numbers<[1], [1], [0], [0], [0, 0, 1, 0], [], []>} : vector<1x32xf32>, vector<128x32xf32>, vector<1x128xf32> -> vector<1x128xf32>
    %16 = vector.broadcast %14 : vector<1x1xf32> to vector<1x128xf32>
    %17 = arith.addf %15, %16 : vector<1x128xf32>
    %c0_15 = arith.constant 0 : index
    %c0_16 = arith.constant 0 : index
    %18 = vector.load %arg8[%c0_15, %c0_16] : memref<1x128xf32, #tpu.memory_space<vmem>>, vector<1x128xf32>
    tpu.vector_store %arg8[%c0_15, %c0_16], %17 {strides = array<i32>} : memref<1x128xf32, #tpu.memory_space<vmem>>, vector<1x128xf32>,
    return
  }
  func.func @transform_0(%arg0: i32) -> (i32, i32) {
    %c0_i32 = arith.constant 0 : i32
    %c0_i32_0 = arith.constant 0 : i32
    return %arg0, %c0_i32 : i32, i32
  }
  func.func @transform_1(%arg0: i32) -> (i32, i32) {
    %c0_i32 = arith.constant 0 : i32
    %c0_i32_0 = arith.constant 0 : i32
    %c0_i32_1 = arith.constant 0 : i32
    return %c0_i32, %c0_i32_0 : i32, i32
  }
  func.func @transform_2(%arg0: i32) -> (i32, i32) {
    %c0_i32 = arith.constant 0 : i32
    %c0_i32_0 = arith.constant 0 : i32
    %c0_i32_1 = arith.constant 0 : i32
    return %c0_i32, %c0_i32_0 : i32, i32
  }
  func.func @transform_3(%arg0: i32) -> (i32, i32) {
    %c0_i32 = arith.constant 0 : i32
    %c0_i32_0 = arith.constant 0 : i32
    %c0_i32_1 = arith.constant 0 : i32
    return %c0_i32, %c0_i32_0 : i32, i32
  }
  func.func @transform_4(%arg0: i32) -> (i32, i32) {
    %c0_i32 = arith.constant 0 : i32
    %c0_i32_0 = arith.constant 0 : i32
    %c0_i32_1 = arith.constant 0 : i32
    return %c0_i32, %c0_i32_0 : i32, i32
  }
  func.func @transform_5(%arg0: i32) -> (i32, i32) {
    %c0_i32 = arith.constant 0 : i32
    %c0_i32_0 = arith.constant 0 : i32
    %c0_i32_1 = arith.constant 0 : i32
    return %c0_i32, %c0_i32_0 : i32, i32
  }
  func.func @transform_6(%arg0: i32) -> (i32, i32) {
    %c0_i32 = arith.constant 0 : i32
    %c0_i32_0 = arith.constant 0 : i32
    %c0_i32_1 = arith.constant 0 : i32
    return %c0_i32, %c0_i32_0 : i32, i32
  }
  func.func @transform_7(%arg0: i32) -> (i32, i32) {
    %c0_i32 = arith.constant 0 : i32
    %c0_i32_0 = arith.constant 0 : i32
    return %c0_i32, %arg0 : i32, i32
  }
}

</mosaic_0001>

<bundles_post_ra>
// kernel: tpu_custom_call.1
= control target key start
LH: loop header
LB: loop body
LE: loop exit
PB: predicated region body
PF: predicated region fallthrough
CT: control target
= control target key end

     0   :  { %s782_s0 = inlined_call_operand.vmem [shape: f32[128,16], index: 0, kind: input, shape index: {}]   ;;  %s783_s1 = inlined_call_operand.vmem [shape: f32[16,32], index: 1, kind: input, shape index: {}]   ;;  %s784_s2 = inlined_call_operand.vmem [shape: f32[1,32], index: 2, kind: input, shape index: {}]   ;;  %s785_s3 = inlined_call_operand.vmem [shape: f32[32,32], index: 3, kind: input, shape index: {}]   ;;  %s786_s4 = inlined_call_operand.vmem [shape: f32[1,32], index: 4, kind: input, shape index: {}]   ;;  %s787_s5 = inlined_call_operand.vmem [shape: f32[1,32], index: 5, kind: input, shape index: {}]   ;;  %s788_s6 = inlined_call_operand.<no memory space> [shape: f32[1,1], index: 6, kind: input, shape index: {}]   ;;  %s789_s7 = inlined_call_operand.hbm [shape: f32[1,128], index: 7, kind: output, shape index: {}]  }
   0x1   :  { %v12_v0 = vstv %s788_s6 }
   0x2   :  { %13 = vst [vmem:[#allocation2] sm:$0x1] %v12_v0 }
   0x3   :  { %v46_v1 = vld [vmem:[%s783_s1 + $0x8] sm:$0xff]  ;;  %v45_v2 = vld [vmem:[%s783_s1] sm:$0xff]  ;;  %vm51_vm0 = vcmask 130048  }
   0x4   :  { %114 = vmatpush.msra.mxu0 %v46_v1  ;;  %v29_v3 = vld [vmem:[%s782_s0] sm:$0xff]  ;;  %464 = vmatpush.msra.mxu3 %v46_v1 }
   0x6   :  { %115 = vmatpush.msra.mxu0 %v45_v2  ;;  %465 = vmatpush.msra.mxu3 %v45_v2 }
   0x7   :  { %14 = vsyncpa [#allocation4], 0  ;;  %415 = vmatmul.msk.f32.vlgmr.msra.gmra.mxu0 %vm51_vm0, %v29_v3  ;;  %v30_v4 = vld [vmem:[%s782_s0 + $0x8] sm:$0xff]  ;;  %v31_v5 = vld [vmem:[%s782_s0 + $0x10] sm:$0xff]  ;;  %vm189_vm1 = vcmask 261120   ;;  %s566_s22 = smov [#allocation3]  }
   0x8   :  { %v32_v6 = vld [vmem:[%s782_s0 + $0x18] sm:$0xff]  ;;  %v33_v7 = vld [vmem:[%s782_s0 + $0x20] sm:$0xff]  ;;  %v34_v8 = vld [vmem:[%s782_s0 + $0x28] sm:$0xff]  ;;  %s404_s23 = sshll.u32 %s566_s22, 4  ;;  %s406_s26 = sshll.u32 %s789_s7, 4  ;;  %s405_s23 = int_to_ptr.vmem [resolvable:$true] %s404_s23  ;;  %s407_s26 = int_to_ptr.hbm [resolvable:$true] %s406_s26 }
   0x9   :  { %v35_v9 = vld [vmem:[%s782_s0 + $0x30] sm:$0xff]  ;;  %v40_v10 = vld [vmem:[%s782_s0 + $0x58] sm:$0xff]  ;;  %v41_v12 = vld [vmem:[%s782_s0 + $0x60] sm:$0xff] }
   0xa   :  { %426 = vmatmul.msk.f32.vlgmr.msra.gmra.mxu3 %vm51_vm0, %v40_v10  ;;  %v36_v11 = vld [vmem:[%s782_s0 + $0x38] sm:$0xff]  ;;  %v37_v13 = vld [vmem:[%s782_s0 + $0x40] sm:$0xff]  ;;  %v42_v14 = vld [vmem:[%s782_s0 + $0x68] sm:$0xff] }
   0xb   :  { %v38_v15 = vld [vmem:[%s782_s0 + $0x48] sm:$0xff]  ;;  %v43_v16 = vld [vmem:[%s782_s0 + $0x70] sm:$0xff]  ;;  %v44_v18 = vld [vmem:[%s782_s0 + $0x78] sm:$0xff] }
   0xc   :  { %v39_v17 = vld [vmem:[%s782_s0 + $0x50] sm:$0xff]  ;;  %v184_v19 = vld [vmem:[%s785_s3 + $0x18] sm:$0xff]  ;;  %v182_v21 = vld [vmem:[%s785_s3 + $0x8] sm:$0xff] }
   0xd   :  { %250 = vmatpush.msra.mxu1 %v184_v19  ;;  %v183_v20 = vld [vmem:[%s785_s3 + $0x10] sm:$0xff]  ;;  %466 = vmatpush.msrb.mxu3 %v184_v19  ;;  %v181_v22 = vld [vmem:[%s785_s3] sm:$0xff] }
   0xe   :  { %v695_v23 = vld [vmem:[%s784_s2] ss:$0 sm:$0xff] }
   0xf   :  { %416 = vmatmul.msk.f32.gmra.mxu0 %vm51_vm0, %v30_v4  ;;  %251 = vmatpush.msra.mxu1 %v183_v20 }
  0x10   :  { %467 = vmatpush.msrb.mxu3 %v183_v20  ;;  %v738_v20 = vld [vmem:[%s786_s4] ss:$0 sm:$0xff] }
  0x11   :  { %252 = vmatpush.msra.mxu1 %v182_v21 }
  0x12   :  { %427 = vmatmul.msk.f32.gmra.mxu3 %vm51_vm0, %v41_v12 }
  0x13   :  { %468 = vmatpush.msrb.mxu3 %v182_v21  ;;  %253 = vmatpush.msra.mxu1 %v181_v22 }
  0x15   :  { %469 = vmatpush.msrb.mxu3 %v181_v22 }
  0x17   :  { %417 = vmatmul.msk.f32.gmra.mxu0 %vm51_vm0, %v31_v5 }
  0x1a   :  { %428 = vmatmul.msk.f32.gmra.mxu3 %vm51_vm0, %v42_v14 }
  0x1f   :  { %418 = vmatmul.msk.f32.gmra.mxu0 %vm51_vm0, %v32_v6 }
  0x22   :  { %429 = vmatmul.msk.f32.gmra.mxu3 %vm51_vm0, %v43_v16 }
  0x27   :  { %419 = vmatmul.msk.f32.gmra.mxu0 %vm51_vm0, %v33_v7 }
  0x2a   :  { %430 = vmatmul.msk.f32.gmra.mxu3 %vm51_vm0, %v44_v18 }
  0x2f   :  { %420 = vmatmul.msk.f32.gmra.mxu0 %vm51_vm0, %v34_v8 }
  0x37   :  { %421 = vmatmul.msk.f32.gmra.mxu0 %vm51_vm0, %v35_v9 }
  0x3f   :  { %422 = vmatmul.msk.f32.gmra.mxu0 %vm51_vm0, %v36_v11 }
  0x47   :  { %423 = vmatmul.msk.f32.gmra.mxu0 %vm51_vm0, %v37_v13 }
  0x4f   :  { %424 = vmatmul.msk.f32.gmra.mxu0 %vm51_vm0, %v38_v15 }
  0x57   :  { %425 = vmatmul.msk.f32.gmra.mxu0 %vm51_vm0, %v39_v17 }
  0x84   :  { %v117_v24 = vpop.f32.mrf.mxu0 }
  0x85   :  { %v118_v25 = vadd.f32 %v695_v23, %v117_v24 }
  0x87   :  { %475 = vtanh.f32 %v118_v25 }
  0x8c   :  { %v120_v26 = vpop.f32.mrf.mxu0 }
  0x8d   :  { %v476_v27 = vpop.eup %475  ;;  %v121_v28 = vadd.f32 %v695_v23, %v120_v26  ;;  %v150_v53 = vpop.f32.mrf.mxu3 }
  0x8e   :  { %431 = vmatmul.msk.f32.vlgmr.msra.gmra.mxu1 %vm189_vm1, %v476_v27  ;;  %v151_v58 = vadd.f32 %v695_v23, %v150_v53 }
  0x8f   :  { %477 = vtanh.f32 %v121_v28 }
  0x94   :  { %v123_v29 = vpop.f32.mrf.mxu0 }
  0x95   :  { %v478_v30 = vpop.eup %477  ;;  %v124_v31 = vadd.f32 %v695_v23, %v123_v29  ;;  %v153_v57 = vpop.f32.mrf.mxu3 }
  0x96   :  { %432 = vmatmul.msk.f32.gmra.mxu1 %vm189_vm1, %v478_v30  ;;  %v154_v60 = vadd.f32 %v695_v23, %v153_v57 }
  0x97   :  { %479 = vtanh.f32 %v124_v31 }
  0x9c   :  { %v126_v32 = vpop.f32.mrf.mxu0 }
  0x9d   :  { %v480_v33 = vpop.eup %479  ;;  %v127_v34 = vadd.f32 %v695_v23, %v126_v32  ;;  %v156_v61 = vpop.f32.mrf.mxu3 }
  0x9e   :  { %433 = vmatmul.msk.f32.gmra.mxu1 %vm189_vm1, %v480_v33  ;;  %v157_v63 = vadd.f32 %v695_v23, %v156_v61 }
  0x9f   :  { %481 = vtanh.f32 %v127_v34 }
  0xa4   :  { %v129_v35 = vpop.f32.mrf.mxu0 }
  0xa5   :  { %v482_v36 = vpop.eup %481  ;;  %v130_v37 = vadd.f32 %v695_v23, %v129_v35  ;;  %v159_v1 = vpop.f32.mrf.mxu3 }
  0xa6   :  { %434 = vmatmul.msk.f32.gmra.mxu1 %vm189_vm1, %v482_v36  ;;  %v160_v2 = vadd.f32 %v695_v23, %v159_v1 }
  0xa7   :  { %483 = vtanh.f32 %v130_v37 }
  0xac   :  { %v132_v38 = vpop.f32.mrf.mxu0 }
  0xad   :  { %v484_v39 = vpop.eup %483  ;;  %v133_v40 = vadd.f32 %v695_v23, %v132_v38  ;;  %v162_v4 = vpop.f32.mrf.mxu3 }
  0xae   :  { %435 = vmatmul.msk.f32.gmra.mxu1 %vm189_vm1, %v484_v39  ;;  %v163_v5 = vadd.f32 %v695_v23, %v162_v4 }
  0xaf   :  { %485 = vtanh.f32 %v133_v40 }
  0xb4   :  { %v135_v41 = vpop.f32.mrf.mxu0 }
  0xb5   :  { %v486_v42 = vpop.eup %485  ;;  %v136_v43 = vadd.f32 %v695_v23, %v135_v41 }
  0xb6   :  { %436 = vmatmul.msk.f32.gmra.mxu1 %vm189_vm1, %v486_v42 }
  0xb7   :  { %487 = vtanh.f32 %v136_v43 }
  0xbc   :  { %v138_v44 = vpop.f32.mrf.mxu0 }
  0xbd   :  { %v488_v45 = vpop.eup %487  ;;  %v139_v46 = vadd.f32 %v695_v23, %v138_v44 }
  0xbe   :  { %437 = vmatmul.msk.f32.gmra.mxu1 %vm189_vm1, %v488_v45  ;;  %v320_v45 = vld [vmem:[#allocation2] sm:$0x1] }
  0xbf   :  { %489 = vtanh.f32 %v139_v46  ;;  %v565_v46 = vmov 0  }
  0xc0   :  { %472 = vset.pattern.permute.xlu0 %v565_v46 }
  0xc1   :  { %323 = vperm.xlu0 %472, %v320_v45  }
  0xc4   :  { %v141_v47 = vpop.f32.mrf.mxu0 }
  0xc5   :  { %v490_v48 = vpop.eup %489  ;;  %v142_v49 = vadd.f32 %v695_v23, %v141_v47 }
  0xc6   :  { %438 = vmatmul.msk.f32.gmra.mxu1 %vm189_vm1, %v490_v48 }
  0xc7   :  { %491 = vtanh.f32 %v142_v49 }
  0xcc   :  { %v144_v50 = vpop.f32.mrf.mxu0 }
  0xcd   :  { %v492_v51 = vpop.eup %491  ;;  %v145_v52 = vadd.f32 %v695_v23, %v144_v50 }
  0xce   :  { %439 = vmatmul.msk.f32.gmra.mxu1 %vm189_vm1, %v492_v51 }
  0xcf   :  { %493 = vtanh.f32 %v145_v52 }
  0xd4   :  { %v147_v54 = vpop.f32.mrf.mxu0 }
  0xd5   :  { %v494_v55 = vpop.eup %493  ;;  %v148_v56 = vadd.f32 %v695_v23, %v147_v54 }
  0xd6   :  { %440 = vmatmul.msk.f32.gmra.mxu1 %vm189_vm1, %v494_v55 }
  0xd7   :  { %495 = vtanh.f32 %v148_v56 }
  0xd8   :  { %497 = vtanh.f32 %v151_v58 }
  0xd9   :  { %499 = vtanh.f32 %v154_v60 }
  0xda   :  { %501 = vtanh.f32 %v157_v63 }
  0xdb   :  { %503 = vtanh.f32 %v160_v2 }
  0xdc   :  { %505 = vtanh.f32 %v163_v5 }
  0xdd   :  { %v496_v59 = vpop.eup %495 }
  0xde   :  { %441 = vmatmul.msk.f32.vlgmr.msrb.gmra.mxu3 %vm189_vm1, %v496_v59  ;;  %v498_v62 = vpop.eup %497  ;;  %v319_v59 = vld [vmem:[%s787_s5] sm:$0x1] }
  0xdf   :  { %v500_v0 = vpop.eup %499 }
  0xe0   :  { %v502_v3 = vpop.eup %501 }
  0xe1   :  { %v504_v6 = vpop.eup %503 }
  0xe2   :  { %v506_v7 = vpop.eup %505 }
  0xe6   :  { %442 = vmatmul.msk.f32.gmra.mxu3 %vm189_vm1, %v498_v62 }
  0xee   :  { %443 = vmatmul.msk.f32.gmra.mxu3 %vm189_vm1, %v500_v0 }
  0xf6   :  { %444 = vmatmul.msk.f32.gmra.mxu3 %vm189_vm1, %v502_v3 }
  0xfe   :  { %445 = vmatmul.msk.f32.gmra.mxu3 %vm189_vm1, %v504_v6 }
 0x106   :  { %446 = vmatmul.msk.f32.gmra.mxu3 %vm189_vm1, %v506_v7 }
 0x10b   :  { %v729_v8 = vpop.f32.mrf.mxu1 }
 0x10c   :  { %v256_v55 = vadd.f32 %v738_v20, %v729_v8 }
 0x113   :  { %v731_v9 = vpop.f32.mrf.mxu1 }
 0x114   :  { %v259_v53 = vadd.f32 %v738_v20, %v731_v9 }
 0x11b   :  { %v733_v10 = vpop.f32.mrf.mxu1 }
 0x11c   :  { %v262_v51 = vadd.f32 %v738_v20, %v733_v10 }
 0x123   :  { %v264_v11 = vpop.f32.mrf.mxu1 }
 0x124   :  { %v265_v49 = vadd.f32 %v738_v20, %v264_v11 }
 0x12b   :  { %v267_v14 = vpop.f32.mrf.mxu1 }
 0x12c   :  { %v268_v47 = vadd.f32 %v738_v20, %v267_v14 }
 0x133   :  { %v270_v16 = vpop.f32.mrf.mxu1  ;;  %v324_v60 = vpop.permute.xlu0 %323 }
 0x134   :  { %v271_v43 = vadd.f32 %v738_v20, %v270_v16  ;;  %v326_v61 = vperm.slane %v324_v60, 0 }
 0x13b   :  { %v273_v18 = vpop.f32.mrf.mxu1 }
 0x13c   :  { %v274_v41 = vadd.f32 %v738_v20, %v273_v18 }
 0x143   :  { %v276_v21 = vpop.f32.mrf.mxu1 }
 0x144   :  { %v277_v39 = vadd.f32 %v738_v20, %v276_v21 }
 0x14b   :  { %v279_v27 = vpop.f32.mrf.mxu1 }
 0x14c   :  { %v280_v37 = vadd.f32 %v738_v20, %v279_v27 }
 0x153   :  { %v282_v33 = vpop.f32.mrf.mxu1 }
 0x154   :  { %v283_v35 = vadd.f32 %v738_v20, %v282_v33 }
 0x161   :  { %v285_v12 = vpop.f32.mrf.mxu3 }
 0x162   :  { %v286_v32 = vadd.f32 %v738_v20, %v285_v12 }
 0x169   :  { %v288_v13 = vpop.f32.mrf.mxu3 }
 0x16a   :  { %v289_v30 = vadd.f32 %v738_v20, %v288_v13 }
 0x171   :  { %v291_v15 = vpop.f32.mrf.mxu3 }
 0x172   :  { %v292_v28 = vadd.f32 %v738_v20, %v291_v15 }
 0x179   :  { %v294_v17 = vpop.f32.mrf.mxu3 }
 0x17a   :  { %v295_v25 = vadd.f32 %v738_v20, %v294_v17 }
 0x181   :  { %v297_v19 = vpop.f32.mrf.mxu3 }
 0x182   :  { %v298_v24 = vadd.f32 %v738_v20, %v297_v19 }
 0x189   :  { %v300_v22 = vpop.f32.mrf.mxu3 }
 0x18a   :  { %v301_v23 = vadd.f32 %v738_v20, %v300_v22 }
 0x18c   :  { %507 = vtanh.f32 %v301_v23 }
 0x18d   :  { %509 = vtanh.f32 %v298_v24 }
 0x18e   :  { %511 = vtanh.f32 %v295_v25 }
 0x18f   :  { %513 = vtanh.f32 %v292_v28 }
 0x190   :  { %515 = vtanh.f32 %v289_v30 }
 0x191   :  { %517 = vtanh.f32 %v286_v32 }
 0x192   :  { %v508_v26 = vpop.eup %507  ;;  %519 = vtanh.f32 %v283_v35 }
 0x193   :  { %447 = vmatpush.xpose.msk.msra.mxu2 %vm189_vm1, %v508_v26  ;;  %v510_v29 = vpop.eup %509  ;;  %521 = vtanh.f32 %v280_v37 }
 0x194   :  { %v512_v31 = vpop.eup %511  ;;  %523 = vtanh.f32 %v277_v39 }
 0x195   :  { %v514_v34 = vpop.eup %513  ;;  %525 = vtanh.f32 %v274_v41 }
 0x196   :  { %v516_v36 = vpop.eup %515  ;;  %527 = vtanh.f32 %v271_v43 }
 0x197   :  { %448 = vmatpush.xpose.msk.msra.mxu2 %vm189_vm1, %v510_v29  ;;  %v518_v38 = vpop.eup %517  ;;  %529 = vtanh.f32 %v268_v47 }
 0x198   :  { %v520_v40 = vpop.eup %519  ;;  %531 = vtanh.f32 %v265_v49 }
 0x199   :  { %v522_v42 = vpop.eup %521  ;;  %533 = vtanh.f32 %v262_v51 }
 0x19a   :  { %v524_v44 = vpop.eup %523  ;;  %535 = vtanh.f32 %v259_v53 }
 0x19b   :  { %449 = vmatpush.xpose.msk.msra.mxu2 %vm189_vm1, %v512_v31  ;;  %v526_v48 = vpop.eup %525  ;;  %537 = vtanh.f32 %v256_v55 }
 0x19c   :  { %v528_v50 = vpop.eup %527 }
 0x19d   :  { %v530_v52 = vpop.eup %529 }
 0x19e   :  { %v532_v54 = vpop.eup %531 }
 0x19f   :  { %450 = vmatpush.xpose.msk.msra.mxu2 %vm189_vm1, %v514_v34  ;;  %v534_v56 = vpop.eup %533 }
 0x1a0   :  { %v536_v57 = vpop.eup %535 }
 0x1a1   :  { %v538_v58 = vpop.eup %537 }
 0x1a3   :  { %451 = vmatpush.xpose.msk.msra.mxu2 %vm189_vm1, %v516_v36 }
 0x1a7   :  { %452 = vmatpush.xpose.msk.msra.mxu2 %vm189_vm1, %v518_v38 }
 0x1ab   :  { %453 = vmatpush.xpose.msk.msra.mxu2 %vm189_vm1, %v520_v40 }
 0x1af   :  { %454 = vmatpush.xpose.msk.msra.mxu2 %vm189_vm1, %v522_v42 }
 0x1b3   :  { %455 = vmatpush.xpose.msk.msra.mxu2 %vm189_vm1, %v524_v44 }
 0x1b7   :  { %456 = vmatpush.xpose.msk.msra.mxu2 %vm189_vm1, %v526_v48 }
 0x1bb   :  { %457 = vmatpush.xpose.msk.msra.mxu2 %vm189_vm1, %v528_v50 }
 0x1bf   :  { %458 = vmatpush.xpose.msk.msra.mxu2 %vm189_vm1, %v530_v52 }
 0x1c3   :  { %459 = vmatpush.xpose.msk.msra.mxu2 %vm189_vm1, %v532_v54 }
 0x1c7   :  { %460 = vmatpush.xpose.msk.msra.mxu2 %vm189_vm1, %v534_v56 }
 0x1cb   :  { %461 = vmatpush.xpose.msk.msra.mxu2 %vm189_vm1, %v536_v57 }
 0x1cf   :  { %462 = vmatpush.xpose.msk.msra.mxu2 %vm189_vm1, %v538_v58 }
 0x1d2   :  { %463 = vmatmul.msk.f32.vlgmr.msra.gmra.mxu2 %vm189_vm1, %v319_v59 }
 0x255   :  { %v395_v62 = vpop.f32.mrf.mxu2 }
 0x256   :  { %v396_v63 = vadd.f32 %v395_v62, %v326_v61 }
 0x258   :  { %398 = vst [vmem:[#allocation3] sm:$0x1] %v396_v63 }
 0x259   :  { %409 = dma.vmem_to_hbm [thread:$0]  %s405_s23, 16, %s407_s26, [#allocation4]  }
 0x25a   :  { %563 = dma.done.wait [#allocation4], 16  }
 0x25b   :  { %564 = vsyncadd [#allocation4], 4294967280 }
 0x25c   :  { %414 = vsyncpa [#allocation4], 1 }

</bundles_post_ra>
